<compile_context>
chip_gen: v7x
topology: tpu7x:2x2x1
jax: 0.10.0
libtpu: 0.0.40
codegen_flags: <defaults>
</compile_context>

<pallas_src>
import functools

import jax
import jax.numpy as jnp
from jax.experimental import pallas as pl
from jax.experimental.pallas import tpu as pltpu

LN_EPS = 1e-5  # PyTorch nn.LayerNorm default


def _layernorm(x, gamma, beta):
    # f32 statistics over the feature (lane) axis.
    mu = jnp.mean(x, axis=-1, keepdims=True)
    var = jnp.mean((x - mu) ** 2, axis=-1, keepdims=True)
    return (x - mu) * jax.lax.rsqrt(var + LN_EPS) * gamma + beta


# ----------------------------------------------------------------------------
# Kernel 1: patch embedding  (patches @ W + b + pos_embedding)
# ----------------------------------------------------------------------------
def embed_kernel(patches_ref, w_ref, b_ref, pos_ref, out_ref):
    # patches_ref: (1, N, K) bf16   w_ref: (K, E) bf16   b_ref: (1, E)   pos_ref: (N, E)
    emb = jnp.dot(patches_ref[0], w_ref[...], preferred_element_type=jnp.float32)
    out_ref[0] = emb + b_ref[...] + pos_ref[...]
    # TODO(synk): EmbedLayer dropout skipped (inference / eval mode).


def embed_forward(patches, w, b, pos):
    B, N, K = patches.shape
    E = w.shape[1]
    return pl.pallas_call(
        embed_kernel,
        out_shape=jax.ShapeDtypeStruct((B, N, E), jnp.float32),
        grid=(B,),
        in_specs=[
            pl.BlockSpec((1, N, K), lambda b: (b, 0, 0)),
            pl.BlockSpec((K, E), lambda b: (0, 0)),
            pl.BlockSpec((1, E), lambda b: (0, 0)),
            pl.BlockSpec((N, E), lambda b: (0, 0)),
        ],
        out_specs=pl.BlockSpec((1, N, E), lambda b: (b, 0, 0)),
        compiler_params=pltpu.CompilerParams(dimension_semantics=("parallel",)),
    )(patches, w, b, pos)


# ----------------------------------------------------------------------------
# Kernel 2: fused encoder stack (L pre-norm TransformerEncoderLayers, GELU MLP)
#           + final LayerNorm + classifier head (fc1 - tanh - fc2) on CLS token.
# ----------------------------------------------------------------------------
def encoder_stack_kernel(x_ref,
                         g1_ref, b1_ref, wqkv_ref, bqkv_ref, wo_ref, bo_ref,
                         g2_ref, b2_ref, w1_ref, bf1_ref, w2_ref, bf2_ref,
                         gf_ref, bfin_ref, cw1_ref, cb1_ref, cw2_ref, cb2_ref,
                         logits_ref, x_scr, *, n_heads, seq_real):
    l = pl.program_id(1)
    bf16 = jnp.bfloat16

    # Load the activation tensor into the VMEM-resident accumulator once per batch row.
    @pl.when(l == 0)
    def _():
        x_scr[...] = x_ref[0]

    x = x_scr[...]                      # (S_pad, E) f32 residual stream
    S_pad, E = x.shape
    hd = E // n_heads

    # ---- multi-head self-attention sub-layer (pre-norm) ----
    xn = _layernorm(x, g1_ref[0], b1_ref[0]).astype(bf16)
    xb = jnp.broadcast_to(xn[None, :, :], (n_heads, S_pad, E))       # heads on batch dim
    # wqkv_ref[0]: (nh, E, 3*hd) bf16 -- 1/sqrt(hd) already folded into the Q columns.
    qkv = jnp.einsum("hse,hed->hsd", xb, wqkv_ref[0],
                     preferred_element_type=jnp.float32) + bqkv_ref[0]  # (nh, S, 3*hd) f32
    q = qkv[:, :, :hd]
    k = qkv[:, :, hd:2 * hd]
    v = qkv[:, :, 2 * hd:]

    s = jnp.einsum("hqd,hkd->hqk", q.astype(bf16), k.astype(bf16),
                   preferred_element_type=jnp.float32)               # (nh, S, S)
    # Mask padded key positions (sequence was zero-padded to S_pad).
    key_ok = jax.lax.broadcasted_iota(jnp.int32, (1, 1, S_pad), 2) < seq_real
    s = jnp.where(key_ok, s, -1e30)
    s = s - jnp.max(s, axis=-1, keepdims=True)
    p = jnp.exp(s)
    p = p * pl.reciprocal(jnp.sum(p, axis=-1, keepdims=True), approx=True)

    ctx = jnp.einsum("hqk,hkd->hqd", p.astype(bf16), v.astype(bf16),
                     preferred_element_type=jnp.float32)             # (nh, S, hd)
    # Output projection: sum_h ctx[h] @ wo[h]  ==  concat(heads) @ Wo
    attn = jnp.einsum("hsd,hde->hse", ctx.astype(bf16), wo_ref[0],
                      preferred_element_type=jnp.float32).sum(axis=0)  # (S, E)
    x = x + attn + bo_ref[0]   # residual; attention dropout is identity in eval mode

    # ---- feed-forward sub-layer (pre-norm), exact GELU (nn.GELU default) ----
    xn2 = _layernorm(x, g2_ref[0], b2_ref[0]).astype(bf16)
    h1 = jnp.dot(xn2, w1_ref[0], preferred_element_type=jnp.float32) + bf1_ref[0]
    h1 = jax.nn.gelu(h1, approximate=False).astype(bf16)
    ff = jnp.dot(h1, w2_ref[0], preferred_element_type=jnp.float32) + bf2_ref[0]
    x = x + ff
    x_scr[...] = x

    # ---- final encoder LayerNorm + classifier head on the CLS row, last layer only ----
    @pl.when(l == pl.num_programs(1) - 1)
    def _():
        cls = _layernorm(x[0:1, :], gf_ref[...], bfin_ref[...]).astype(bf16)
        h = jnp.tanh(jnp.dot(cls, cw1_ref[...], preferred_element_type=jnp.float32)
                     + cb1_ref[...]).astype(bf16)
        logits_ref[0] = (jnp.dot(h, cw2_ref[...], preferred_element_type=jnp.float32)
                         + cb2_ref[...])


def encoder_stack_forward(xseq, pp, *, seq_real):
    B, S_pad, E = xseq.shape
    L = pp["wqkv_h"].shape[0]
    nh = pp["wqkv_h"].shape[1]
    NC = pp["cls_w2"].shape[1]

    # Per-layer (stacked) operand: leading L axis indexed by the layer grid axis.
    def lspec(trailing_shape):
        nd = len(trailing_shape)
        return pl.BlockSpec((1,) + tuple(trailing_shape),
                            lambda b, l, _nd=nd: (l,) + (0,) * _nd)

    # Constant operand (classifier / final LN): fetched once, index never changes.
    def cspec(shape):
        nd = len(shape)
        return pl.BlockSpec(tuple(shape), lambda b, l, _nd=nd: (0,) * _nd)

    kern = functools.partial(encoder_stack_kernel, n_heads=nh, seq_real=seq_real)
    out = pl.pallas_call(
        kern,
        out_shape=jax.ShapeDtypeStruct((B, 1, NC), jnp.float32),
        grid=(B, L),
        in_specs=[
            pl.BlockSpec((1, S_pad, E), lambda b, l: (b, 0, 0)),
            lspec(pp["g1"].shape[1:]), lspec(pp["b1"].shape[1:]),
            lspec(pp["wqkv_h"].shape[1:]), lspec(pp["bqkv_h"].shape[1:]),
            lspec(pp["wo_h"].shape[1:]), lspec(pp["bo"].shape[1:]),
            lspec(pp["g2"].shape[1:]), lspec(pp["b2"].shape[1:]),
            lspec(pp["w1"].shape[1:]), lspec(pp["bf1"].shape[1:]),
            lspec(pp["w2"].shape[1:]), lspec(pp["bf2"].shape[1:]),
            cspec(pp["final_ln_g"].shape), cspec(pp["final_ln_b"].shape),
            cspec(pp["cls_w1"].shape), cspec(pp["cls_b1"].shape),
            cspec(pp["cls_w2"].shape), cspec(pp["cls_b2"].shape),
        ],
        out_specs=pl.BlockSpec((1, 1, NC), lambda b, l: (b, 0, 0)),
        scratch_shapes=[pltpu.VMEM((S_pad, E), jnp.float32)],
        # Weights stream per layer (bf16, double-buffered by the grid's layer axis), so
        # VMEM residency is ~2 layers of bf16 weights + one activation tile — fits the
        # default scoped VMEM on v5e/v6e/v7x at these (and ViT-B) sizes.
        compiler_params=pltpu.CompilerParams(
            dimension_semantics=("parallel", "arbitrary")),
    )(xseq,
      pp["g1"], pp["b1"], pp["wqkv_h"], pp["bqkv_h"], pp["wo_h"], pp["bo"],
      pp["g2"], pp["b2"], pp["w1"], pp["bf1"], pp["w2"], pp["bf2"],
      pp["final_ln_g"], pp["final_ln_b"], pp["cls_w1"], pp["cls_b1"],
      pp["cls_w2"], pp["cls_b2"])
    return out


# ----------------------------------------------------------------------------
# Full model
# ----------------------------------------------------------------------------
def vit_forward(x_img, pp):
    B, C, Hh, Ww = x_img.shape
    P = pp["patch_size"]
    Hp, Wp = Hh // P, Ww // P
    N = Hp * Wp
    E = pp["embed_w"].shape[1]

    # im2col: exactly equivalent to Conv2d(k=s=P) + reshape(B,E,N) + permute(0,2,1)
    xp = x_img.reshape(B, C, Hp, P, Wp, P).transpose(0, 2, 4, 1, 3, 5)
    patches = xp.reshape(B, N, C * P * P).astype(jnp.bfloat16)

    emb = embed_forward(patches, pp["embed_w"], pp["embed_b"], pp["pos"])   # (B, N, E) f32

    # CLS prepend + zero-pad the sequence to a multiple of 8 (plain-JAX glue).
    cls_tok = jnp.broadcast_to(pp["cls"][None, :, :], (B, 1, E))
    xseq = jnp.concatenate([cls_tok, emb], axis=1)                          # (B, S, E)
    S = N + 1
    S_pad = ((S + 7) // 8) * 8
    xseq = jnp.pad(xseq, ((0, 0), (0, S_pad - S), (0, 0)))

    logits = encoder_stack_forward(xseq, pp, seq_real=S)                    # (B, 1, NC)
    return logits.reshape(B, -1)


# ----------------------------------------------------------------------------
# Parameters: PyTorch-faithful init, then host-side packing for the TPU kernels
# ----------------------------------------------------------------------------
def init_params(key, *, n_channels, embed_dim, n_layers, n_heads, forward_mul,
                image_size, patch_size, n_classes):
    def tn(k, shape, std=0.02):
        return (std * jax.random.truncated_normal(k, -2.0, 2.0, shape)).astype(jnp.float32)

    K = n_channels * patch_size * patch_size
    H = forward_mul * embed_dim
    N = (image_size // patch_size) ** 2
    keys = iter(jax.random.split(key, 8 + 4 * n_layers))

    params = {
        "patch_size": patch_size,
        "n_heads": n_heads,
        # Conv2d weight (E, C, P, P) flattened -> (K, E) so that patches @ W works
        "embed_w": tn(next(keys), (embed_dim, K)).T,
        "embed_b": jnp.zeros((1, embed_dim), jnp.float32),
        "pos": tn(next(keys), (N, embed_dim)),
        "cls": tn(next(keys), (1, embed_dim)),
        "final_ln_g": jnp.ones((1, embed_dim), jnp.float32),
        "final_ln_b": jnp.zeros((1, embed_dim), jnp.float32),
        "cls_w1": tn(next(keys), (embed_dim, embed_dim)),
        "cls_b1": jnp.zeros((1, embed_dim), jnp.float32),
        "cls_w2": tn(next(keys), (embed_dim, n_classes)),
        "cls_b2": jnp.zeros((1, n_classes), jnp.float32),
        "layers": [],
    }
    for _ in range(n_layers):
        params["layers"].append({
            "g1": jnp.ones((1, embed_dim), jnp.float32),
            "b1": jnp.zeros((1, embed_dim), jnp.float32),
            "wqkv": tn(next(keys), (embed_dim, 3 * embed_dim)),
            "bqkv": jnp.zeros((1, 3 * embed_dim), jnp.float32),
            "wo": tn(next(keys), (embed_dim, embed_dim)),
            "bo": jnp.zeros((1, embed_dim), jnp.float32),
            "g2": jnp.ones((1, embed_dim), jnp.float32),
            "b2": jnp.zeros((1, embed_dim), jnp.float32),
            "w1": tn(next(keys), (embed_dim, H)),
            "bf1": jnp.zeros((1, H), jnp.float32),
            "w2": tn(next(keys), (H, embed_dim)),
            "bf2": jnp.zeros((1, embed_dim), jnp.float32),
        })
    return params


def pack_params(p):
    """One-time host-side repack: stack layers, split heads, fold 1/sqrt(hd) into Q,
    cast matmul weights to bf16 (biases / LN params stay f32)."""
    bf16 = jnp.bfloat16
    nh = p["n_heads"]
    E = p["embed_w"].shape[1]
    hd = E // nh
    scale = 1.0 / (hd ** 0.5)

    def split_in(w):   # (E, E) -> (nh, E, hd): head h uses output columns h*hd:(h+1)*hd
        return w.reshape(E, nh, hd).transpose(1, 0, 2)

    acc = {k: [] for k in ["g1", "b1", "wqkv_h", "bqkv_h", "wo_h", "bo",
                           "g2", "b2", "w1", "bf1", "w2", "bf2"]}
    for lp in p["layers"]:
        wq = split_in(lp["wqkv"][:, :E]) * scale
        wk = split_in(lp["wqkv"][:, E:2 * E])
        wv = split_in(lp["wqkv"][:, 2 * E:])
        acc["wqkv_h"].append(jnp.concatenate([wq, wk, wv], axis=-1))      # (nh, E, 3*hd)
        bq = lp["bqkv"][0, :E].reshape(nh, 1, hd) * scale
        bk = lp["bqkv"][0, E:2 * E].reshape(nh, 1, hd)
        bv = lp["bqkv"][0, 2 * E:].reshape(nh, 1, hd)
        acc["bqkv_h"].append(jnp.concatenate([bq, bk, bv], axis=-1))      # (nh, 1, 3*hd)
        acc["wo_h"].append(lp["wo"].reshape(nh, hd, E))                   # (nh, hd, E)
        for k in ["g1", "b1", "bo", "g2", "b2", "w1", "bf1", "w2", "bf2"]:
            acc[k].append(lp[k])

    packed = {
        "patch_size": p["patch_size"],
        "n_heads": nh,
        "embed_w": p["embed_w"].astype(bf16),
        "embed_b": p["embed_b"],
        "pos": p["pos"],
        "cls": p["cls"],
        "final_ln_g": p["final_ln_g"], "final_ln_b": p["final_ln_b"],
        "cls_w1": p["cls_w1"].astype(bf16), "cls_b1": p["cls_b1"],
        "cls_w2": p["cls_w2"].astype(bf16), "cls_b2": p["cls_b2"],
    }
    for k, vals in acc.items():
        stacked = jnp.stack(vals)
        if k in ("wqkv_h", "wo_h", "w1", "w2"):
            stacked = stacked.astype(bf16)
        packed[k] = stacked
    return packed


if __name__ == "__main__":
    B, C, IMG, PATCH = 2, 4, 16, 4          # -> 16 patches, seq = 17 (padded to 24)
    E, NH, NL, FM, NC = 32, 4, 2, 2, 10     # embed 32, 4 heads, 2 layers, hidden 64

    key = jax.random.PRNGKey(0)
    kx, kp = jax.random.split(key)
    x = jax.random.normal(kx, (B, C, IMG, IMG), jnp.float32)
    params = init_params(kp, n_channels=C, embed_dim=E, n_layers=NL, n_heads=NH,
                         forward_mul=FM, image_size=IMG, patch_size=PATCH,
                         n_classes=NC)
    packed = pack_params(params)

    logits = vit_forward(x, packed)
    jax.block_until_ready(logits)
    assert logits.shape == (B, NC) and logits.dtype == jnp.float32
    assert bool(jnp.all(jnp.isfinite(logits)))
    print("KERNEL_OK")
</pallas_src>

<mosaic_0001>
module attributes {stable_mosaic.version = 11 : i64} {
  func.func @embed_kernel(%arg0: i32, %arg1: memref<1x16x64xbf16, #tpu.memory_space<vmem>>, %arg2: memref<64x32xbf16, #tpu.memory_space<vmem>>, %arg3: memref<1x32xf32, #tpu.memory_space<vmem>>, %arg4: memref<16x32xf32, #tpu.memory_space<vmem>>, %arg5: memref<1x16x32xf32, #tpu.memory_space<vmem>>) attributes {dimension_semantics = [#tpu.dimension_semantics<parallel>], iteration_bounds = array<i64: 2>, scalar_prefetch = 0 : i64, scratch_operands = 0 : i64, tpu.core_type = #tpu.core_type<tc>, window_params = [{transform_indices = @transform_0, window_bounds = array<i64: 1, 16, 64>}, {pipeline_mode = #tpu.pipeline_mode<synchronous>, transform_indices = @transform_1, window_bounds = array<i64: 64, 32>}, {pipeline_mode = #tpu.pipeline_mode<synchronous>, transform_indices = @transform_2, window_bounds = array<i64: 1, 32>}, {pipeline_mode = #tpu.pipeline_mode<synchronous>, transform_indices = @transform_3, window_bounds = array<i64: 16, 32>}, {transform_indices = @transform_4, window_bounds = array<i64: 1, 16, 32>}]} {
    %c0 = arith.constant 0 : index
    %c0_0 = arith.constant 0 : index
    %c0_1 = arith.constant 0 : index
    %0 = vector.load %arg1[%c0, %c0_0, %c0_1] : memref<1x16x64xbf16, #tpu.memory_space<vmem>>, vector<1x16x64xbf16>
    %1 = vector.shape_cast %0 : vector<1x16x64xbf16> to vector<16x64xbf16>
    %c0_2 = arith.constant 0 : index
    %c0_3 = arith.constant 0 : index
    %2 = vector.load %arg2[%c0_2, %c0_3] : memref<64x32xbf16, #tpu.memory_space<vmem>>, vector<64x32xbf16>
    %cst = arith.constant dense<0.000000e+00> : vector<16x32xf32>
    %3 = tpu.matmul %1, %2, %cst {dimension_numbers = #tpu.dot_dimension_numbers<[1], [0], [0], [1], [0, 0, 1, 1], [], []>} : vector<16x64xbf16>, vector<64x32xbf16>, vector<16x32xf32> -> vector<16x32xf32>
    %c0_4 = arith.constant 0 : index
    %c0_5 = arith.constant 0 : index
    %4 = vector.load %arg3[%c0_4, %c0_5] : memref<1x32xf32, #tpu.memory_space<vmem>>, vector<1x32xf32>
    %5 = vector.broadcast %4 : vector<1x32xf32> to vector<16x32xf32>
    %6 = arith.addf %3, %5 : vector<16x32xf32>
    %c0_6 = arith.constant 0 : index
    %c0_7 = arith.constant 0 : index
    %7 = vector.load %arg4[%c0_6, %c0_7] : memref<16x32xf32, #tpu.memory_space<vmem>>, vector<16x32xf32>
    %8 = arith.addf %6, %7 : vector<16x32xf32>
    %c0_8 = arith.constant 0 : index
    %c0_9 = arith.constant 0 : index
    %c0_10 = arith.constant 0 : index
    %9 = vector.load %arg5[%c0_8, %c0_9, %c0_10] : memref<1x16x32xf32, #tpu.memory_space<vmem>>, vector<1x16x32xf32>
    %10 = vector.shape_cast %9 : vector<1x16x32xf32> to vector<16x32xf32>
    %11 = vector.shape_cast %8 : vector<16x32xf32> to vector<1x16x32xf32>
    tpu.vector_store %arg5[%c0_8, %c0_9, %c0_10], %11 {strides = array<i32>} : memref<1x16x32xf32, #tpu.memory_space<vmem>>, vector<1x16x32xf32>,
    return
  }
  func.func @transform_0(%arg0: i32) -> (i32, i32, i32) {
    %c0_i32 = arith.constant 0 : i32
    %c0_i32_0 = arith.constant 0 : i32
    %c0_i32_1 = arith.constant 0 : i32
    return %arg0, %c0_i32, %c0_i32_0 : i32, i32, i32
  }
  func.func @transform_1(%arg0: i32) -> (i32, i32) {
    %c0_i32 = arith.constant 0 : i32
    %c0_i32_0 = arith.constant 0 : i32
    %c0_i32_1 = arith.constant 0 : i32
    return %c0_i32, %c0_i32_0 : i32, i32
  }
  func.func @transform_2(%arg0: i32) -> (i32, i32) {
    %c0_i32 = arith.constant 0 : i32
    %c0_i32_0 = arith.constant 0 : i32
    %c0_i32_1 = arith.constant 0 : i32
    return %c0_i32, %c0_i32_0 : i32, i32
  }
  func.func @transform_3(%arg0: i32) -> (i32, i32) {
    %c0_i32 = arith.constant 0 : i32
    %c0_i32_0 = arith.constant 0 : i32
    %c0_i32_1 = arith.constant 0 : i32
    return %c0_i32, %c0_i32_0 : i32, i32
  }
  func.func @transform_4(%arg0: i32) -> (i32, i32, i32) {
    %c0_i32 = arith.constant 0 : i32
    %c0_i32_0 = arith.constant 0 : i32
    %c0_i32_1 = arith.constant 0 : i32
    return %arg0, %c0_i32, %c0_i32_0 : i32, i32, i32
  }
}

</mosaic_0001>

<bundles_post_ra>
// kernel: tpu_custom_call.1
= control target key start
LH: loop header
LB: loop body
LE: loop exit
PB: predicated region body
PF: predicated region fallthrough
CT: control target
= control target key end

     0   :  { %9 = vsyncpa [#allocation3], 0  ;;  %s675_s0 = inlined_call_operand.vmem [shape: bf16[2,16,64], index: 0, kind: input, shape index: {}]   ;;  %s676_s1 = inlined_call_operand.vmem [shape: bf16[64,32], index: 1, kind: input, shape index: {}]   ;;  %s677_s2 = inlined_call_operand.vmem [shape: f32[1,32], index: 2, kind: input, shape index: {}]   ;;  %s678_s3 = inlined_call_operand.vmem [shape: f32[16,32], index: 3, kind: input, shape index: {}]   ;;  %s679_s4 = inlined_call_operand.hbm [shape: f32[2,16,32], index: 4, kind: output, shape index: {}]  }
   0x1   :  { %11 = vsyncpa [#allocation3 + $0x1], 0  ;;  %s551_s15 = smov 0   ;;  %s553_s16 = smov 0  }
   0x2   :  { %s555_s17 = smov 0   ;;  %s557_s18 = smov 0  }
   0x3 LB: > { %s572_s19 = sadd.s32 4294967295, %s519_s18   ;;  %s371_s20 = sadd.s32 4294967294, %s519_s18   ;;  %s519_s18 = sphi %s557_s18, %s685_s18   ;;  %s515_s17 = sphi %s555_s17, %s684_s17   ;;  %s511_s16 = sphi %s553_s16, %s683_s16   ;;  %s507_s15 = sphi %s551_s15, %s682_s15  }
   0x4   : > { %s576_s21 = sadd.s32 1, %s519_s18   ;;  %s113_s22 = sadd.s32 1, %s515_s17 }
   0x5   : > { %s110_s23 = ssub.s32 %s519_s18, %s576_s21  ;;  %p123_p0 = scmp.ne.s32.totalorder %s515_s17, %s511_s16 }
   0x6   : > { %p111_p1 = scmp.eq.s32.totalorder %s110_s23, 0  ;;  %p124_p2 = scmp.eq.s32.totalorder %s572_s19, 1 }
   0x7   : > { %p129_p3 = scmp.ne.s32.totalorder %s511_s16, %s507_s15  ;;  %p130_p4 = scmp.eq.s32.totalorder %s371_s20, 1 }
   0x8   : > { %s587_s24 = scalar_select %p111_p1, %s515_s17, %s113_s22  }
   0x9   : > { %p589_p5 = por %p124_p2, %p123_p0  ;;  %p593_p6 = por %p130_p4, %p129_p3 }
   0xa   : > { %p374_p7 = scmp.ge.s32.totalorder %s519_s18, 1  ;;  %p165_p8 = scmp.lt.s32.totalorder %s519_s18, 3 }
   0xc   : > { %p166_p9 = pnand %p374_p7, %p165_p8 }
   0xd   : > { %v452_v0 = vld [vmem:[%s676_s1] sm:$0xff] (!%p166_p9)   ;;  %v521_v1 = vmov (!%p166_p9), 0.0   ;;  %v453_v2 = vld [vmem:[%s676_s1 + $0x8] sm:$0xff] (!%p166_p9)   ;;  %vm522_vm0 = vmmov (!%p166_p9), 0   ;;  %p191_p10 = scmp.lt.s32.totalorder (!%p166_p9), %s572_s19, 1  ;;  %v454_v3 = vld [vmem:[%s676_s1 + $0x10] sm:$0xff] (!%p166_p9)  }
   0xe   : > { %169 = sbr.rel (%p166_p9) target bundleno = 263 (0x107), region = 36  ;;  %397 = vmatprep.subr.bf16.mxu0 (!%p166_p9), %v521_v1  ;;  %405 = vmatprep.mubr.msk.bf16.mxu0 (!%p166_p9), %vm522_vm0, %v521_v1  ;;  %v455_v4 = vld [vmem:[%s676_s1 + $0x18] sm:$0xff] (!%p166_p9)   ;;  %vm243_vm1 = vcmask (!%p166_p9), 523264   ;;  %s188_s14 = sand.u32 (!%p166_p9), 1, %s511_s16   ;;  %v378_v6 = vld [vmem:[%s677_s2] ss:$0 sm:$0xff] (!%p166_p9) }
   0xf   : > { %398 = vmatpush3.bf16.msra.mxu0 (!%p166_p9), %v452_v0  ;;  %s375_s20 = sshll.u32 (!%p166_p9), %s188_s14, 4  ;;  %v288_v8 = vld [vmem:[%s678_s3] sm:$0xff] (!%p166_p9)  ;;  %vm292_vm2 = vcmask (!%p166_p9), 261120   ;;  %v289_v12 = vld [vmem:[%s678_s3 + $0x8] sm:$0xff] (!%p166_p9)  ;;  %s523_s12 = smov (!%p166_p9), [#allocation2]  }
  0x10   : > { %399 = vmatprep.subr.bf16.mxu0 (!%p166_p9), %v521_v1  ;;  %s190_s29 = scalar_lea.vmem (!%p166_p9), [#allocation2], %s375_s20  ;;  %s461_s13 = sshll.u32 (!%p166_p9), %s523_s12, 4  ;;  %s462_s13 = int_to_ptr.vmem [resolvable:$false] %s461_s13 }
  0x11   : > { %s309_s30 = sshll.u32 (!%p166_p9), %s190_s29, 4  ;;  %s463_s20 = scalar_lea.vmem (!%p166_p9), %s462_s13, 512  ;;  %s632_s30 = int_to_ptr.vmem [resolvable:$true] %s309_s30 }
  0x12   : > { %p464_p0 = scmp.lt.s32.totalorder (!%p166_p9), %s632_s30, %s462_s13 }
  0x13   : > { %400 = vmatpush3.bf16.msra.mxu0 (!%p166_p9), %v453_v2 }
  0x14   : > { %401 = vmatprep.subr.bf16.mxu0 (!%p166_p9), %v521_v1 }
  0x15   : > { %s192_s5 = scalar_select %p191_p10, %s572_s19, 1 }
  0x17   : > { %s390_s8 = sshll.u32 %s192_s5, 3  ;;  %402 = vmatpush3.bf16.msra.mxu0 %v454_v3  ;;  %s391_s5 = sshll.u32 %s572_s19, 8 }
  0x18   : > { %s195_s11 = scalar_lea.vmem %s675_s0, %s390_s8  ;;  %403 = vmatprep.subr.bf16.mxu0 %v521_v1  ;;  %s630_s10 = scalar_lea.hbm %s679_s4, %s391_s5 }
  0x19   : > { %v456_v5 = vld [vmem:[%s195_s11] sm:$0xff]   ;;  %s634_s19 = scalar_lea.sflag [#allocation3], %s188_s14  ;;  %s457_s11 = scalar_lea.vmem %s632_s30, 256 }
  0x1a   : > { %p458_p11 = scmp.ne.s32.totalorder %s632_s30, %s457_s11  ;;  %p465_p1 = scmp.lt.s32.totalorder %s463_s20, %s457_s11 }
  0x1b   : > { %404 = vmatpush3.bf16.msra.mxu0 %v455_v4 }
  0x1c   : > { %p459_p12 = pnand %p458_p11, %p589_p5  ;;  %p466_p2 = por %p465_p1, %p464_p0 }
  0x1e   : > { %406 = vmatmul.mubr.msk.bf16.vlgmr.msra.gmra.mrb[0].mxu0 %vm243_vm1, %v456_v5  ;;  %p460_p13 = pneg %p459_p12 }
  0x20   : > { %p467_p3 = pnand %p466_p2, %p460_p13 }
  0xf1   : > { %v281_v7 = vpop.f32.mrb[0].mxu0 }
  0xf2   : > { %v282_v9 = vadd.f32 %v378_v6, %v281_v7  ;;  %v407_v10 = vpop.f32.mrb[1].mxu0 }
  0xf3   : > { %v284_v11 = vpop.f32.mrb[2].mxu0 }
  0xf4   : > { %v290_v13 = vadd.f32 %v288_v8, %v282_v9  ;;  %v285_v14 = vadd.f32 %v378_v6, %v284_v11  ;;  %v408_v15 = vpop.f32.mrb[3].mxu0 }
  0xf6   : > { %293 = vst.msk [vmem:[%s190_s29] sm:$0xff] %vm292_vm2, %v290_v13  ;;  %v291_v16 = vadd.f32 %v289_v12, %v285_v14 }
  0xf8   : > { %294 = vst.msk [vmem:[%s190_s29 + $0x8] sm:$0xff] %vm292_vm2, %v291_v16 }
  0xf9   : > { %470 = shalt.err (!%p467_p3)
}
  0xfa   : > { %s471_s14 = scalar_lea.hbm %s630_s10, 256  ;;  %s475_s27 = scalar_lea.hbm %s679_s4, 512 }
  0xfb   : > { %p472_p4 = scmp.ne.s32.totalorder %s630_s10, %s471_s14  ;;  %p476_p9 = scmp.lt.u32.totalorder %s630_s10, %s679_s4 }
  0xfc   : > { %p477_p10 = scmp.lt.u32.totalorder %s475_s27, %s471_s14  ;;  %p479_p12 = scmp.lt.u32.totalorder %s471_s14, %s630_s10 }
  0xfd   : > { %p473_p7 = pnand %p472_p4, %p589_p5 }
  0xfe   : > { %p478_p11 = por %p477_p10, %p476_p9 }
  0xff   : > { %p474_p8 = pneg %p473_p7 }
 0x100   : > { %p480_p13 = por %p479_p12, %p478_p11 }
 0x102   : > { %p481_p0 = pnand %p480_p13, %p474_p8 }
 0x104   : > { %484 = shalt.err (!%p481_p0)
}
 0x105   : > { %s524_s5 = smov 128   ;;  %s525_s6 = smov 8  }
 0x106   : > { %409 = dma.vmem_to_hbm [thread:$0]  (%p589_p5), %s632_s30, 256, %s630_s10, %s634_s19, %s524_s5, %s524_s5, %s525_s6  }
 0x107 PF: > { %p415_p1 = scmp.ge.s32.totalorder %s519_s18, 2  ;;  %s324_s7 = sand.u32 1, %s507_s15  }
 0x108   : > { %s325_s8 = scalar_lea.sflag [#allocation3], %s324_s7 }
 0x109   : > { %p412_p2 = pnand %p415_p1, %p593_p6 }
 0x10b   : > { %502 = dma.done.wait (!%p412_p2), %s325_s8, 256  }
 0x10c   : > { %504 = vsyncadd (!%p412_p2), %s325_s8, 4294967040  ;;  %p14_p3 = scmp.ge.s32.totalorder %s576_s21, 4   ;;  %s682_s15 = smov %s511_s16 }
 0x10d   : > { %s683_s16 = smov %s515_s17  ;;  %s684_s17 = smov %s587_s24 }
 0x10e   : > { %s685_s18 = smov %s576_s21  ;;  %16 = sbr.rel (!%p14_p3) target bundleno = 3 (0x3), region = 71 }
 0x115   :  { %330 = vsyncpa [#allocation3], 1 }
 0x116   :  { %332 = vsyncpa [#allocation3 + $0x1], 1 }

</bundles_post_ra>
